<compile_context>
chip_gen: v7x
topology: tpu7x:2x2x1
jax: 0.10.0
libtpu: 0.0.40
codegen_flags: <defaults>
</compile_context>

<pallas_src>
import functools

import jax
import jax.numpy as jnp
from jax.experimental import pallas as pl
from jax.experimental.pallas import tpu as pltpu


# ----------------------------------------------------------------------------
# Kernel 1: collapsed g network + object-axis reduction (grid over N)
# ----------------------------------------------------------------------------
def rn_g_kernel(x_ref, wg_ref, bg_ref, part_ref, acc_ref):
    """Grid = (n_cores, tiles_per_core).

    x_ref   : (tile_n, input_size)  bf16  -- streamed tile of objects
    wg_ref  : (input_size, g_size)  bf16  -- collapsed g weight, VMEM-resident
    bg_ref  : (1, g_size)           f32   -- collapsed g bias (sublane broadcast)
    part_ref: (1, 8, g_size)        f32   -- per-core partial sums (written once)
    acc_ref : (8, g_size)           f32   -- VMEM scratch accumulator
    """
    i = pl.program_id(1)

    @pl.when(i == 0)
    def _():
        acc_ref[...] = jnp.zeros_like(acc_ref)

    # Collapsed g network: Linear -> Linear fused to one bf16 matmul (f32 acc).
    h = jnp.dot(x_ref[...], wg_ref[...], preferred_element_type=jnp.float32)
    g = jnp.maximum(h + bg_ref[...], 0.0)            # (tile_n, g_size) f32

    # Partial reduction down to 8 sublane rows: pure VPU (vreg) adds per step;
    # the final cross-sublane (XLU) reduce is deferred to the f kernel.
    tile_n, g_size = g.shape
    acc_ref[...] += jnp.sum(g.reshape(tile_n // 8, 8, g_size), axis=0)

    @pl.when(i == pl.num_programs(1) - 1)
    def _():
        part_ref[...] = acc_ref[...].reshape(part_ref.shape)


# ----------------------------------------------------------------------------
# Kernel 2: final reduce + collapsed f network (runs once, whole arrays in VMEM)
# ----------------------------------------------------------------------------
def rn_f_kernel(part_ref, wf_ref, bf_ref, out_ref):
    parts = part_ref[...]                                       # (n_cores, 8, g)
    g_sum = jnp.sum(parts.reshape(-1, parts.shape[-1]), axis=0, keepdims=True)
    f = jnp.dot(g_sum, wf_ref[...],
                preferred_element_type=jnp.float32) + bf_ref[...]
    out_ref[...] = jnp.maximum(f, 0.0)


# ----------------------------------------------------------------------------
# Wrapper
# ----------------------------------------------------------------------------
@functools.partial(jax.jit, static_argnames=("tile_n", "n_cores"))
def rn_forward(x, params, tile_n=512, n_cores=2):
    """params = (w1, b1, w2, b2, w3, b3, w4, b4), weights in (in, out) layout."""
    w1, b1, w2, b2, w3, b3, w4, b4 = params
    n, input_size = x.shape
    g_size = w2.shape[1]
    f_size = w4.shape[1]
    assert tile_n % 16 == 0, "tile_n must be a multiple of 16 (bf16 packing)"

    # --- collapse consecutive Linears (exact: no nonlinearity in between) ---
    wg = w1 @ w2                       # (input_size, g_size)
    bg = b1 @ w2 + b2                  # (1, g_size)
    wf = w3 @ w4                       # (g_size, f_size)
    bf = b3 @ w4 + b4                  # (1, f_size)

    # --- grid layout: split the N reduction over n_cores x tiles_per_core ---
    tiles_per_core = max(1, pl.cdiv(pl.cdiv(max(n, 1), tile_n), n_cores))
    n_pad = n_cores * tiles_per_core * tile_n
    pad_rows = n_pad - n

    x_pad = jnp.pad(x, ((0, pad_rows), (0, 0))) if pad_rows else x

    # Each zero-padded row contributes exactly relu(bg) to the sum; fold the
    # one-time correction into the f bias instead of masking every grid step.
    bf_adj = bf - (pad_rows * jnp.maximum(bg, 0.0)) @ wf

    # Stream x / wg in bf16 (kernel is HBM-bandwidth bound); accum stays f32.
    x_bf16 = x_pad.astype(jnp.bfloat16)
    wg_bf16 = wg.astype(jnp.bfloat16)

    cost = pl.CostEstimate(
        flops=2 * n_pad * input_size * g_size,
        transcendentals=0,
        bytes_accessed=(x_bf16.size * 2 + wg_bf16.size * 2 + bg.size * 4
                        + n_cores * 8 * g_size * 4),
    )

    grid_spec = pltpu.PrefetchScalarGridSpec(
        num_scalar_prefetch=0,
        grid=(n_cores, tiles_per_core),
        in_specs=[
            # x: streamed tile-by-tile over the object axis.
            pl.BlockSpec((tile_n, input_size),
                         lambda c, i: (c * tiles_per_core + i, 0)),
            # collapsed g weight / bias: VMEM-resident across the whole grid.
            pl.BlockSpec((input_size, g_size), lambda c, i: (0, 0)),
            pl.BlockSpec((1, g_size), lambda c, i: (0, 0)),
        ],
        out_specs=pl.BlockSpec((1, 8, g_size), lambda c, i: (c, 0, 0)),
        scratch_shapes=[pltpu.VMEM((8, g_size), jnp.float32)],
    )

    partials = pl.pallas_call(
        rn_g_kernel,
        out_shape=jax.ShapeDtypeStruct((n_cores, 8, g_size), jnp.float32),
        grid_spec=grid_spec,
        compiler_params=pltpu.CompilerParams(
            dimension_semantics=("parallel", "arbitrary")),
        cost_estimate=cost,
    )(x_bf16, wg_bf16, bg)

    # Tiny finalize kernel: whole arrays fit in VMEM, no grid needed.
    out = pl.pallas_call(
        rn_f_kernel,
        out_shape=jax.ShapeDtypeStruct((1, f_size), jnp.float32),
    )(partials, wf, bf_adj)

    # PyTorch returns a 1-D vector of shape (f_size,)
    return out[0]


# ----------------------------------------------------------------------------
# Init + pure-JAX reference (un-collapsed, f32 — matches the PyTorch graph)
# ----------------------------------------------------------------------------
def init_params(key, input_size, g_size, f_size):
    def linear(k, fan_in, fan_out):
        kw, kb = jax.random.split(k)
        bound = 1.0 / jnp.sqrt(jnp.float32(fan_in))
        w = jax.random.uniform(kw, (fan_in, fan_out), jnp.float32, -bound, bound)
        b = jax.random.uniform(kb, (1, fan_out), jnp.float32, -bound, bound)
        return w, b

    k1, k2, k3, k4 = jax.random.split(key, 4)
    w1, b1 = linear(k1, input_size, g_size)
    w2, b2 = linear(k2, g_size, g_size)
    w3, b3 = linear(k3, g_size, f_size)
    w4, b4 = linear(k4, f_size, f_size)
    return (w1, b1, w2, b2, w3, b3, w4, b4)


def rn_reference(x, params):
    w1, b1, w2, b2, w3, b3, w4, b4 = params
    g = jnp.maximum((x @ w1 + b1) @ w2 + b2, 0.0)
    g_sum = jnp.sum(g, axis=0, keepdims=True)
    f = jnp.maximum((g_sum @ w3 + b3) @ w4 + b4, 0.0)
    return f[0]


if __name__ == "__main__":
    # Small-but-realistic shapes; N is NOT a multiple of tile_n * n_cores so the
    # pad-correction path is exercised.
    N, input_size, g_size, f_size = 600, 64, 64, 32
    tile_n, n_cores = 256, 2

    key = jax.random.PRNGKey(0)
    kx, kp = jax.random.split(key)
    x = jax.random.normal(kx, (N, input_size), dtype=jnp.float32)
    params = init_params(kp, input_size, g_size, f_size)

    out = rn_forward(x, params, tile_n=tile_n, n_cores=n_cores)
    out = jax.block_until_ready(out)

    ref = rn_reference(x, params)
    assert out.shape == (f_size,)
    # x / wg are streamed in bf16 (f32 accumulation), so compare against the
    # f32 reference with a correspondingly loose tolerance.
    err = jnp.max(jnp.abs(out - ref))
    scale = jnp.maximum(jnp.max(jnp.abs(ref)), 1.0)
    assert err <= 5e-2 * scale, f"max abs err {err} vs scale {scale}"

    print("KERNEL_OK")
</pallas_src>

<mosaic_0001>
module attributes {stable_mosaic.version = 11 : i64} {
  func.func @rn_g_kernel(%arg0: i32, %arg1: i32, %arg2: memref<256x64xbf16, #tpu.memory_space<vmem>>, %arg3: memref<64x64xbf16, #tpu.memory_space<vmem>>, %arg4: memref<1x64xf32, #tpu.memory_space<vmem>>, %arg5: memref<1x8x64xf32, #tpu.memory_space<vmem>>, %arg6: memref<8x64xf32, #tpu.memory_space<vmem>>) attributes {dimension_semantics = [#tpu.dimension_semantics<parallel>, #tpu.dimension_semantics<arbitrary>], iteration_bounds = array<i64: 2, 2>, scalar_prefetch = 0 : i64, scratch_operands = 1 : i64, tpu.core_type = #tpu.core_type<tc>, window_params = [{transform_indices = @transform_0, window_bounds = array<i64: 256, 64>}, {pipeline_mode = #tpu.pipeline_mode<synchronous>, transform_indices = @transform_1, window_bounds = array<i64: 64, 64>}, {pipeline_mode = #tpu.pipeline_mode<synchronous>, transform_indices = @transform_2, window_bounds = array<i64: 1, 64>}, {transform_indices = @transform_3, window_bounds = array<i64: 1, 8, 64>}]} {
    %c0_i32 = arith.constant 0 : i32
    %0 = arith.cmpi eq, %arg1, %c0_i32 : i32
    %1 = arith.extui %0 : i1 to i32
    %c0_i32_0 = arith.constant 0 : i32
    %2 = arith.cmpi ne, %1, %c0_i32_0 : i32
    scf.if %2 {
      %cst_13 = arith.constant 0.000000e+00 : f32
      %19 = vector.broadcast %cst_13 : f32 to vector<8x64xf32>
      %c0_14 = arith.constant 0 : index
      %c0_15 = arith.constant 0 : index
      %20 = vector.load %arg6[%c0_14, %c0_15] : memref<8x64xf32, #tpu.memory_space<vmem>>, vector<8x64xf32>
      tpu.vector_store %arg6[%c0_14, %c0_15], %19 {strides = array<i32>} : memref<8x64xf32, #tpu.memory_space<vmem>>, vector<8x64xf32>,
    } else {
    }
    %c0 = arith.constant 0 : index
    %c0_1 = arith.constant 0 : index
    %3 = vector.load %arg2[%c0, %c0_1] : memref<256x64xbf16, #tpu.memory_space<vmem>>, vector<256x64xbf16>
    %c0_2 = arith.constant 0 : index
    %c0_3 = arith.constant 0 : index
    %4 = vector.load %arg3[%c0_2, %c0_3] : memref<64x64xbf16, #tpu.memory_space<vmem>>, vector<64x64xbf16>
    %cst = arith.constant dense<0.000000e+00> : vector<256x64xf32>
    %5 = tpu.matmul %3, %4, %cst {dimension_numbers = #tpu.dot_dimension_numbers<[1], [0], [0], [1], [0, 0, 1, 1], [], []>} : vector<256x64xbf16>, vector<64x64xbf16>, vector<256x64xf32> -> vector<256x64xf32>
    %c0_4 = arith.constant 0 : index
    %c0_5 = arith.constant 0 : index
    %6 = vector.load %arg4[%c0_4, %c0_5] : memref<1x64xf32, #tpu.memory_space<vmem>>, vector<1x64xf32>
    %7 = vector.broadcast %6 : vector<1x64xf32> to vector<256x64xf32>
    %8 = arith.addf %5, %7 : vector<256x64xf32>
    %cst_6 = arith.constant 0.000000e+00 : f32
    %9 = vector.broadcast %cst_6 : f32 to vector<256x64xf32>
    %10 = arith.maximumf %8, %9 : vector<256x64xf32>
    %c0_7 = arith.constant 0 : index
    %c0_8 = arith.constant 0 : index
    %11 = vector.load %arg6[%c0_7, %c0_8] : memref<8x64xf32, #tpu.memory_space<vmem>>, vector<8x64xf32>
    %12 = vector.shape_cast %10 : vector<256x64xf32> to vector<32x8x64xf32>
    %cst_9 = arith.constant dense<0.000000e+00> : vector<8x64xf32>
    %13 = vector.multi_reduction <add>, %12, %cst_9 [0] : vector<32x8x64xf32> to vector<8x64xf32>
    %14 = arith.addf %11, %13 : vector<8x64xf32>
    %c0_10 = arith.constant 0 : index
    %c0_11 = arith.constant 0 : index
    %15 = vector.load %arg6[%c0_10, %c0_11] : memref<8x64xf32, #tpu.memory_space<vmem>>, vector<8x64xf32>
    tpu.vector_store %arg6[%c0_10, %c0_11], %14 {strides = array<i32>} : memref<8x64xf32, #tpu.memory_space<vmem>>, vector<8x64xf32>,
    %c1_i32 = arith.constant 1 : i32
    %16 = arith.cmpi eq, %arg1, %c1_i32 : i32
    %17 = arith.extui %16 : i1 to i32
    %c0_i32_12 = arith.constant 0 : i32
    %18 = arith.cmpi ne, %17, %c0_i32_12 : i32
    scf.if %18 {
      %c0_13 = arith.constant 0 : index
      %c0_14 = arith.constant 0 : index
      %19 = vector.load %arg6[%c0_13, %c0_14] : memref<8x64xf32, #tpu.memory_space<vmem>>, vector<8x64xf32>
      %20 = vector.shape_cast %19 : vector<8x64xf32> to vector<1x8x64xf32>
      %c0_15 = arith.constant 0 : index
      %c0_16 = arith.constant 0 : index
      %c0_17 = arith.constant 0 : index
      %21 = vector.load %arg5[%c0_15, %c0_16, %c0_17] : memref<1x8x64xf32, #tpu.memory_space<vmem>>, vector<1x8x64xf32>
      tpu.vector_store %arg5[%c0_15, %c0_16, %c0_17], %20 {strides = array<i32>} : memref<1x8x64xf32, #tpu.memory_space<vmem>>, vector<1x8x64xf32>,
    } else {
    }
    return
  }
  func.func @transform_0(%arg0: i32, %arg1: i32) -> (i32, i32) {
    %c2_i32 = arith.constant 2 : i32
    %0 = arith.muli %arg0, %c2_i32 : i32
    %1 = arith.addi %0, %arg1 : i32
    %c0_i32 = arith.constant 0 : i32
    %c0_i32_0 = arith.constant 0 : i32
    return %1, %c0_i32 : i32, i32
  }
  func.func @transform_1(%arg0: i32, %arg1: i32) -> (i32, i32) {
    %c0_i32 = arith.constant 0 : i32
    %c0_i32_0 = arith.constant 0 : i32
    %c0_i32_1 = arith.constant 0 : i32
    return %c0_i32, %c0_i32_0 : i32, i32
  }
  func.func @transform_2(%arg0: i32, %arg1: i32) -> (i32, i32) {
    %c0_i32 = arith.constant 0 : i32
    %c0_i32_0 = arith.constant 0 : i32
    %c0_i32_1 = arith.constant 0 : i32
    return %c0_i32, %c0_i32_0 : i32, i32
  }
  func.func @transform_3(%arg0: i32, %arg1: i32) -> (i32, i32, i32) {
    %c0_i32 = arith.constant 0 : i32
    %c0_i32_0 = arith.constant 0 : i32
    %c0_i32_1 = arith.constant 0 : i32
    return %arg0, %c0_i32, %c0_i32_0 : i32, i32, i32
  }
}

module attributes {stable_mosaic.version = 11 : i64} {
  func.func @rn_f_kernel(%arg0: memref<2x8x64xf32, #tpu.memory_space<vmem>>, %arg1: memref<64x32xf32, #tpu.memory_space<vmem>>, %arg2: memref<1x32xf32, #tpu.memory_space<vmem>>, %arg3: memref<1x32xf32, #tpu.memory_space<vmem>>) attributes {dimension_semantics = [], scalar_prefetch = 0 : i64, scratch_operands = 0 : i64, tpu.core_type = #tpu.core_type<tc>} {
    %c0 = arith.constant 0 : index
    %c0_0 = arith.constant 0 : index
    %c0_1 = arith.constant 0 : index
    %0 = vector.load %arg0[%c0, %c0_0, %c0_1] : memref<2x8x64xf32, #tpu.memory_space<vmem>>, vector<2x8x64xf32>
    %1 = vector.shape_cast %0 : vector<2x8x64xf32> to vector<16x64xf32>
    %cst = arith.constant dense<0.000000e+00> : vector<64xf32>
    %2 = vector.multi_reduction <add>, %1, %cst [0] : vector<16x64xf32> to vector<64xf32>
    %3 = vector.shape_cast %2 : vector<64xf32> to vector<1x64xf32>
    %c0_2 = arith.constant 0 : index
    %c0_3 = arith.constant 0 : index
    %4 = vector.load %arg1[%c0_2, %c0_3] : memref<64x32xf32, #tpu.memory_space<vmem>>, vector<64x32xf32>
    %cst_4 = arith.constant dense<0.000000e+00> : vector<1x32xf32>
    %5 = tpu.matmul %3, %4, %cst_4 {dimension_numbers = #tpu.dot_dimension_numbers<[1], [0], [0], [1], [0, 0, 1, 1], [], []>} : vector<1x64xf32>, vector<64x32xf32>, vector<1x32xf32> -> vector<1x32xf32>
    %c0_5 = arith.constant 0 : index
    %c0_6 = arith.constant 0 : index
    %6 = vector.load %arg2[%c0_5, %c0_6] : memref<1x32xf32, #tpu.memory_space<vmem>>, vector<1x32xf32>
    %7 = arith.addf %5, %6 : vector<1x32xf32>
    %cst_7 = arith.constant 0.000000e+00 : f32
    %8 = vector.broadcast %cst_7 : f32 to vector<1x32xf32>
    %9 = arith.maximumf %7, %8 : vector<1x32xf32>
    %c0_8 = arith.constant 0 : index
    %c0_9 = arith.constant 0 : index
    %10 = vector.load %arg3[%c0_8, %c0_9] : memref<1x32xf32, #tpu.memory_space<vmem>>, vector<1x32xf32>
    tpu.vector_store %arg3[%c0_8, %c0_9], %9 {strides = array<i32>} : memref<1x32xf32, #tpu.memory_space<vmem>>, vector<1x32xf32>,
    return
  }
}

</mosaic_0001>

<bundles_post_ra>
// kernel: rn_forward.3
= control target key start
LH: loop header
LB: loop body
LE: loop exit
PB: predicated region body
PF: predicated region fallthrough
CT: control target
= control target key end

     0   :  { %v195_v3 = vmov 0.0|0.0   ;;  %vm196_vm0 = vmmov 0   ;;  %v197_v6 = vmov 0.0   ;;  %vm17_vm1 = vcmask 523264   ;;  %s267_s0 = inlined_call_operand.vmem [shape: f32[2,8,64], index: 0, kind: input, shape index: {}]   ;;  %s268_s1 = inlined_call_operand.vmem [shape: f32[64,32], index: 1, kind: input, shape index: {}]   ;;  %s269_s2 = inlined_call_operand.vmem [shape: f32[1,32], index: 2, kind: input, shape index: {}]   ;;  %s270_s3 = inlined_call_operand.hbm [shape: f32[1,32], index: 3, kind: output, shape index: {}]  }
   0x1   :  { %v27_v0 = vld [vmem:[%s268_s1] sm:$0xff]  ;;  %v28_v1 = vld [vmem:[%s268_s1 + $0x8] sm:$0xff]  ;;  %v29_v2 = vld [vmem:[%s268_s1 + $0x10] sm:$0xff]  ;;  %155 = vmatprep.subr.bf16.mxu0 %v195_v3  ;;  %152 = vmatprep.mubr.msk.f32.mxu0 %vm196_vm0, %v197_v6 }
   0x2   :  { %v156_v4 = vpack.c.bf16 %v28_v1, %v27_v0  ;;  %v30_v5 = vld [vmem:[%s268_s1 + $0x18] sm:$0xff]  ;;  %v15_v7 = vld [vmem:[%s267_s0] sm:$0xff]  ;;  %v16_v9 = vld [vmem:[%s267_s0 + $0x8] sm:$0xff] }
   0x3   :  { %v159_v8 = vpack.c.bf16 %v30_v5, %v29_v2  ;;  %v18_v10 = vsel %vm17_vm1, %v15_v7, 0.0 }
   0x4   :  { %157 = vmatpush3.bf16.msra.mxu0 %v156_v4 }
   0x5   :  { %8 = vsyncpa [#allocation3], 0  ;;  %158 = vmatprep.subr.bf16.mxu0 %v195_v3  ;;  %v31_v11 = vld [vmem:[%s268_s1 + $0x20] sm:$0xff]  ;;  %v32_v12 = vld [vmem:[%s268_s1 + $0x28] sm:$0xff]  ;;  %v19_v13 = vsel %vm17_vm1, %v16_v9, 0.0  ;;  %s198_s6 = smov [#allocation2]  }
   0x6   :  { %v20_v14 = vadd.f32 %v19_v13, %v18_v10  ;;  %v162_v15 = vpack.c.bf16 %v32_v12, %v31_v11  ;;  %v33_v17 = vld [vmem:[%s268_s1 + $0x30] sm:$0xff]  ;;  %v34_v18 = vld [vmem:[%s268_s1 + $0x38] sm:$0xff]  ;;  %v35_v25 = vld [vmem:[%s269_s2] sm:$0x1]  ;;  %s118_s7 = sshll.u32 %s198_s6, 4  ;;  %vm110_vm2 = vcmask 253952   ;;  %s119_s7 = int_to_ptr.vmem [resolvable:$true] %s118_s7 }
   0x7   :  { %v165_v20 = vpack.c.bf16 %v34_v18, %v33_v17  ;;  %s171_s1 = scalar_lea.vmem %s119_s7, 16  ;;  %s175_s8 = scalar_lea.vmem %s119_s7, 32 }
   0x8   :  { %160 = vmatpush3.bf16.msra.mxu0 %v159_v8  ;;  %v21_v16 = vrot.slane %v20_v14, 4  ;;  %p172_p0 = scmp.ne.s32.totalorder %s119_s7, %s171_s1  ;;  %p176_p1 = scmp.lt.s32.totalorder %s119_s7, %s119_s7 }
   0x9   :  { %161 = vmatprep.subr.bf16.mxu0 %v195_v3  ;;  %p177_p2 = scmp.lt.s32.totalorder %s175_s8, %s171_s1 }
   0xa   :  { %v22_v19 = vadd.f32 %v21_v16, %v20_v14 }
   0xb   :  { %p178_p3 = por %p177_p2, %p176_p1 }
   0xc   :  { %163 = vmatpush3.bf16.msra.mxu0 %v162_v15  ;;  %v23_v21 = vrot.slane %v22_v19, 2 }
   0xd   :  { %164 = vmatprep.subr.bf16.mxu0 %v195_v3  ;;  %p179_p4 = pnand %p178_p3, %p172_p0 }
   0xe   :  { %v24_v22 = vadd.f32 %v23_v21, %v22_v19 }
  0x10   :  { %166 = vmatpush3.bf16.msra.mxu0 %v165_v20  ;;  %v25_v23 = vrot.slane %v24_v22, 1 }
  0x12   :  { %v26_v24 = vadd.f32 %v25_v23, %v24_v22 }
  0x14   :  { %153 = vmatmul.mubr.msk.f32.vlgmr.msra.gmra.mrb[0].mxu0 %vm17_vm1, %v26_v24 }
  0xe7   :  { %v105_v26 = vpop.f32.mrb[0].mxu0 }
  0xe8   :  { %v106_v27 = vadd.f32 %v105_v26, %v35_v25  ;;  %v154_v28 = vpop.f32.mrb[1].mxu0 }
  0xea   :  { %v109_v29 = vmax.f32 %v106_v27, 0.0 }
  0xec   :  { %111 = vst.msk [vmem:[#allocation2] sm:$0x1] %vm110_vm2, %v109_v29 }
  0xed   :  { %182 = shalt.err (!%p179_p4)
}
  0xee   :  { %s183_s2 = scalar_lea.hbm %s270_s3, 16 }
  0xef   :  { %p184_p5 = scmp.ne.s32.totalorder %s270_s3, %s183_s2  ;;  %p187_p6 = scmp.lt.u32.totalorder %s183_s2, %s270_s3 }
  0xf1   :  { %p189_p7 = pnand %p187_p6, %p184_p5 }
  0xf3   :  { %192 = shalt.err (!%p189_p7)
}
  0xf4   :  { %121 = dma.vmem_to_hbm [thread:$0]  %s119_s7, 16, %s270_s3, [#allocation3]  }
  0xf5   :  { %193 = dma.done.wait [#allocation3], 16  }
  0xf6   :  { %194 = vsyncadd [#allocation3], 4294967280 }
  0xf7   :  { %125 = vsyncpa [#allocation3], 1 }

// kernel: rn_forward.2
= control target key start
LH: loop header
LB: loop body
LE: loop exit
PB: predicated region body
PF: predicated region fallthrough
CT: control target
= control target key end

     0   :  { %s975_s12 = smov 0   ;;  %s977_s13 = smov 0   ;;  %s1196_s0 = inlined_call_operand.vmem [shape: bf16[1024,64], index: 0, kind: input, shape index: {}]   ;;  %s1197_s1 = inlined_call_operand.vmem [shape: bf16[64,64], index: 1, kind: input, shape index: {}]   ;;  %s1198_s2 = inlined_call_operand.vmem [shape: f32[1,64], index: 2, kind: input, shape index: {}]   ;;  %s1199_s3 = inlined_call_operand.vmem [shape: f32[2,8,64], index: 3, kind: output, shape index: {}]  }
   0x1   :  { %s979_s14 = smov 0   ;;  %s981_s15 = smov 0  }
   0x2   :  { %s983_s16 = smov 0  }
   0x3 LB: > { %s22_s17 = sadd.s32 1, %s944_s14  ;;  %s25_s18 = sadd.s32 1, %s948_s15  ;;  %s952_s16 = sphi %s983_s16, %s13_s16   ;;  %s948_s15 = sphi %s981_s15, %s1203_s15   ;;  %s944_s14 = sphi %s979_s14, %s1202_s14   ;;  %s940_s13 = sphi %s977_s13, %s1201_s13   ;;  %s936_s12 = sphi %s975_s12, %s1200_s12  }
   0x4   : > { %p23_p0 = scmp.ge.s32.totalorder %s22_s17, 2  ;;  %p739_p1 = scmp.ge.s32.totalorder %s952_s16, 1 }
   0x5   : > { %p158_p2 = scmp.lt.s32.totalorder %s952_s16, 5 }
   0x6   : > { %s1205_s17 = smov (%p23_p0, %s22_s17), 0  ;;  %s1207_s18 = smov (!%p23_p0, %s25_s18), %s948_s15 }
   0x7   : > { %p159_p3 = pnand %p739_p1, %p158_p2  ;;  %p27_p4 = scmp.ge.s32.totalorder %s1207_s18, 2 }
   0x8   : > { %s740_s19 = sshll.u32 (!%p159_p3), %s940_s13, 1  ;;  %p193_p5 = scmp.lt.s32.totalorder (!%p159_p3), %s940_s13, 1 }
   0x9   : > { %s1209_s18 = smov (%p27_p4, %s1207_s18), 0  ;;  %162 = sbr.rel (%p159_p3) target bundleno = 336 (0x150), region = 32 }
   0xa   : > { %s184_s20 = sadd.s32 (!%p159_p3), %s936_s12, %s740_s19  ;;  %p744_p7 = scmp.ne.s32.totalorder (!%p159_p3), %s936_s12, 0 }
   0xb   : > { %s741_s21 = sshll.u32 (!%p159_p3), %s184_s20, 5 }
   0xc   : > { %p186_p6 = scmp.lt.s32.totalorder (!%p159_p3), %s741_s21, 127 }
  0x10   : > { %s1211_s13 = smov (!%p193_p5, %s940_s13), 1  ;;  %s1213_s21 = smov (!%p186_p6, %s741_s21), 127 }
  0x11   : > { %s743_s22 = sshll.u32 %s1211_s13, 3  ;;  %s742_s23 = sshll.u32 %s1213_s21, 2  ;;  %vm202_vm0 = vcmask (!%p744_p7), 523264   ;;  %v954_v0 = vmov (!%p744_p7), 0.0  }
  0x12   : > { %s1011_s26 = scalar_lea.vmem %s1199_s3, %s743_s22  ;;  %s1016_s29 = scalar_lea.vmem %s1196_s0, %s742_s23  ;;  %203 = vst.msk [vmem:[#allocation2] sm:$0xff] (!%p744_p7), %vm202_vm0, %v954_v0 }
  0x13   : > { %201 = sbr.rel (%p744_p7) target bundleno = 26 (0x1a), region = 36 }
  0x1a PF: > { %v894_v1 = vld [vmem:[%s1197_s1] sm:$0xff]   ;;  %v895_v2 = vld [vmem:[%s1197_s1 + $0x8] sm:$0xff]   ;;  %v896_v3 = vld [vmem:[%s1197_s1 + $0x10] sm:$0xff]   ;;  %vm355_vm1 = vcmask 523264   ;;  %p782_p8 = scmp.ne.s32.totalorder %s936_s12, 1 }
  0x1b   : > { %805 = vmatprep.subr.bf16.mxu0 %v894_v1  ;;  %845 = vmatprep.subr.bf16.mxu1 %v894_v1  ;;  %v898_v4 = vld [vmem:[%s1016_s29] sm:$0xff]   ;;  %v897_v5 = vld [vmem:[%s1197_s1 + $0x18] sm:$0xff]   ;;  %v899_v6 = vld [vmem:[%s1016_s29 + $0x8] sm:$0xff]  }
  0x1c   : > { %806 = vmatpush3.bf16.msra.mxu0 %v894_v1  ;;  %849 = vmatpush3.bf16.msra.mxu1 %v894_v1  ;;  %v906_v7 = vld [vmem:[%s1016_s29 + $0x40] sm:$0xff]   ;;  %v900_v8 = vld [vmem:[%s1016_s29 + $0x10] sm:$0xff]   ;;  %v907_v9 = vld [vmem:[%s1016_s29 + $0x48] sm:$0xff]  }
  0x1d   : > { %807 = vmatprep.subr.bf16.mxu0 %v895_v2  ;;  %846 = vmatprep.subr.bf16.mxu1 %v895_v2  ;;  %v908_v10 = vld [vmem:[%s1016_s29 + $0x50] sm:$0xff]   ;;  %v901_v11 = vld [vmem:[%s1016_s29 + $0x18] sm:$0xff]   ;;  %v902_v13 = vld [vmem:[%s1016_s29 + $0x20] sm:$0xff]  }
  0x1e   : > { %813 = vmatprep.mubr.msk.bf16.mxu0 %vm355_vm1, %v898_v4  ;;  %829 = vmatprep.mubr.msk.bf16.mxu1 %vm355_vm1, %v906_v7  ;;  %v909_v12 = vld [vmem:[%s1016_s29 + $0x58] sm:$0xff]   ;;  %v910_v14 = vld [vmem:[%s1016_s29 + $0x60] sm:$0xff]   ;;  %v903_v15 = vld [vmem:[%s1016_s29 + $0x28] sm:$0xff]  }
  0x1f   : > { %v911_v16 = vld [vmem:[%s1016_s29 + $0x68] sm:$0xff]   ;;  %v904_v17 = vld [vmem:[%s1016_s29 + $0x30] sm:$0xff]   ;;  %v905_v19 = vld [vmem:[%s1016_s29 + $0x38] sm:$0xff]  }
  0x20   : > { %808 = vmatpush3.bf16.msra.mxu0 %v895_v2  ;;  %850 = vmatpush3.bf16.msra.mxu1 %v895_v2  ;;  %v912_v18 = vld [vmem:[%s1016_s29 + $0x70] sm:$0xff]   ;;  %v913_v20 = vld [vmem:[%s1016_s29 + $0x78] sm:$0xff]   ;;  %v1066_v21 = vld [vmem:[%s1198_s2] ss:$0 sm:$0xff] }
  0x21   : > { %809 = vmatprep.subr.bf16.mxu0 %v896_v3  ;;  %847 = vmatprep.subr.bf16.mxu1 %v896_v3 }
  0x24   : > { %810 = vmatpush3.bf16.msra.mxu0 %v896_v3  ;;  %851 = vmatpush3.bf16.msra.mxu1 %v896_v3 }
  0x25   : > { %811 = vmatprep.subr.bf16.mxu0 %v897_v5  ;;  %848 = vmatprep.subr.bf16.mxu1 %v897_v5 }
  0x28   : > { %812 = vmatpush3.bf16.msra.mxu0 %v897_v5  ;;  %852 = vmatpush3.bf16.msra.mxu1 %v897_v5 }
  0x2b   : > { %814 = vmatmul.mubr.msk.bf16.vlgmr.msra.gmra.mrb[0].mxu0 %vm355_vm1, %v899_v6  ;;  %830 = vmatmul.mubr.msk.bf16.vlgmr.msra.gmra.mrb[0].mxu1 %vm355_vm1, %v907_v9 }
  0x2c   : > { %817 = vmatprep.mubr.msk.bf16.mxu0 %vm355_vm1, %v900_v8  ;;  %833 = vmatprep.mubr.msk.bf16.mxu1 %vm355_vm1, %v908_v10 }
  0x33   : > { %818 = vmatmul.mubr.msk.bf16.gmra.mrb[4].mxu0 %vm355_vm1, %v901_v11  ;;  %834 = vmatmul.mubr.msk.bf16.gmra.mrb[4].mxu1 %vm355_vm1, %v909_v12 }
  0x34   : > { %821 = vmatprep.mubr.msk.bf16.mxu0 %vm355_vm1, %v902_v13  ;;  %837 = vmatprep.mubr.msk.bf16.mxu1 %vm355_vm1, %v910_v14 }
  0x3b   : > { %822 = vmatmul.mubr.msk.bf16.gmra.mrb[8].mxu0 %vm355_vm1, %v903_v15  ;;  %838 = vmatmul.mubr.msk.bf16.gmra.mrb[8].mxu1 %vm355_vm1, %v911_v16 }
  0x3c   : > { %825 = vmatprep.mubr.msk.bf16.mxu0 %vm355_vm1, %v904_v17  ;;  %841 = vmatprep.mubr.msk.bf16.mxu1 %vm355_vm1, %v912_v18 }
  0x43   : > { %826 = vmatmul.mubr.msk.bf16.gmra.mrb[12].mxu0 %vm355_vm1, %v905_v19  ;;  %842 = vmatmul.mubr.msk.bf16.gmra.mrb[12].mxu1 %vm355_vm1, %v913_v20 }
  0xfe   : > { %v815_v22 = vpop.f32.mrb[0].mxu0  ;;  %v1068_v23 = vpop.f32.mrb[0].mxu1 }
  0xff   : > { %v438_v24 = vpop.f32.mrb[1].mxu0  ;;  %v1070_v25 = vpop.f32.mrb[1].mxu1  ;;  %v447_v26 = vadd.f32 %v815_v22, %v1066_v21 }
 0x100   : > { %v439_v27 = vadd.f32 %v1066_v21, %v438_v24  ;;  %v816_v28 = vpop.f32.mrb[2].mxu0  ;;  %v1074_v29 = vpop.f32.mrb[2].mxu1 }
 0x101   : > { %v441_v30 = vpop.f32.mrb[3].mxu0  ;;  %v1076_v31 = vpop.f32.mrb[3].mxu1  ;;  %v450_v33 = vadd.f32 %v816_v28, %v1066_v21  ;;  %v567_v35 = vmax.f32 %v447_v26, 0.0 }
 0x102   : > { %v565_v32 = vmax.f32 %v439_v27, 0.0  ;;  %v442_v34 = vadd.f32 %v1066_v21, %v441_v30 }
 0x103   : > { %v568_v38 = vmax.f32 %v450_v33, 0.0  ;;  %v601_v45 = vsel %vm355_vm1, %v567_v35, 0.0 }
 0x104   : > { %v566_v36 = vmax.f32 %v442_v34, 0.0  ;;  %v598_v37 = vsel %vm355_vm1, %v565_v32, 0.0 }
 0x105   : > { %v603_v53 = vsel %vm355_vm1, %v568_v38, 0.0 }
 0x106   : > { %v599_v39 = vsel %vm355_vm1, %v566_v36, 0.0  ;;  %v819_v40 = vpop.f32.mrb[4].mxu0  ;;  %v1082_v41 = vpop.f32.mrb[4].mxu1 }
 0x107   : > { %v600_v42 = vadd.f32 %v599_v39, %v598_v37  ;;  %v454_v43 = vpop.f32.mrb[5].mxu0  ;;  %v1084_v44 = vpop.f32.mrb[5].mxu1  ;;  %v463_v46 = vadd.f32 %v819_v40, %v1066_v21 }
 0x108   : > { %v455_v47 = vadd.f32 %v1066_v21, %v454_v43  ;;  %v820_v48 = vpop.f32.mrb[6].mxu0  ;;  %v1089_v49 = vpop.f32.mrb[6].mxu1 }
 0x109   : > { %v602_v50 = vadd.f32 %v601_v45, %v600_v42  ;;  %v457_v51 = vpop.f32.mrb[7].mxu0  ;;  %v1091_v52 = vpop.f32.mrb[7].mxu1  ;;  %v466_v55 = vadd.f32 %v820_v48, %v1066_v21  ;;  %v571_v58 = vmax.f32 %v463_v46, 0.0  ;;  %v503_v42 = vadd.f32 %v1066_v21, %v1070_v25 }
 0x10a   : > { %v569_v54 = vmax.f32 %v455_v47, 0.0  ;;  %v458_v56 = vadd.f32 %v1066_v21, %v457_v51  ;;  %v506_v25 = vadd.f32 %v1066_v21, %v1076_v31 }
 0x10b   : > { %v604_v57 = vadd.f32 %v603_v53, %v602_v50  ;;  %v572_v62 = vmax.f32 %v466_v55, 0.0  ;;  %v609_v5 = vsel %vm355_vm1, %v571_v58, 0.0  ;;  %v581_v58 = vmax.f32 %v503_v42, 0.0 }
 0x10c   : > { %v605_v59 = vsel %vm355_vm1, %v569_v54, 0.0  ;;  %v570_v60 = vmax.f32 %v458_v56, 0.0 }
 0x10d   : > { %v606_v61 = vadd.f32 %v605_v59, %v604_v57  ;;  %v611_v13 = vsel %vm355_vm1, %v572_v62, 0.0 }
 0x10e   : > { %v607_v63 = vsel %vm355_vm1, %v570_v60, 0.0  ;;  %v823_v0 = vpop.f32.mrb[8].mxu0  ;;  %v1098_v1 = vpop.f32.mrb[8].mxu1 }
 0x10f   : > { %v608_v2 = vadd.f32 %v607_v63, %v606_v61  ;;  %v470_v3 = vpop.f32.mrb[9].mxu0  ;;  %v1100_v4 = vpop.f32.mrb[9].mxu1  ;;  %v479_v6 = vadd.f32 %v823_v0, %v1066_v21  ;;  %v511_v61 = vadd.f32 %v1068_v23, %v1066_v21  ;;  %v514_v63 = vadd.f32 %v1074_v29, %v1066_v21 }
 0x110   : > { %v471_v7 = vadd.f32 %v1066_v21, %v470_v3  ;;  %v824_v8 = vpop.f32.mrb[10].mxu0  ;;  %v1105_v9 = vpop.f32.mrb[10].mxu1  ;;  %v582_v3 = vmax.f32 %v506_v25, 0.0  ;;  %v522_v23 = vadd.f32 %v1066_v21, %v1091_v52 }
 0x111   : > { %v610_v10 = vadd.f32 %v609_v5, %v608_v2  ;;  %v473_v11 = vpop.f32.mrb[11].mxu0  ;;  %v1107_v12 = vpop.f32.mrb[11].mxu1  ;;  %v482_v15 = vadd.f32 %v824_v8, %v1066_v21  ;;  %v575_v18 = vmax.f32 %v479_v6, 0.0  ;;  %v629_v2 = vsel %vm355_vm1, %v581_v58, 0.0 }
 0x112   : > { %v573_v14 = vmax.f32 %v471_v7, 0.0  ;;  %v474_v16 = vadd.f32 %v1066_v21, %v473_v11  ;;  %v519_v5 = vadd.f32 %v1066_v21, %v1084_v44  ;;  %v583_v31 = vmax.f32 %v511_v61, 0.0 }
 0x113   : > { %v612_v17 = vadd.f32 %v611_v13, %v610_v10  ;;  %v576_v24 = vmax.f32 %v482_v15, 0.0  ;;  %v617_v34 = vsel %vm355_vm1, %v575_v18, 0.0  ;;  %v584_v8 = vmax.f32 %v514_v63, 0.0 }
 0x114   : > { %v613_v19 = vsel %vm355_vm1, %v573_v14, 0.0  ;;  %v574_v20 = vmax.f32 %v474_v16, 0.0  ;;  %v631_v10 = vsel %vm355_vm1, %v582_v3, 0.0  ;;  %v585_v11 = vmax.f32 %v519_v5, 0.0 }
 0x115   : > { %v614_v22 = vadd.f32 %v613_v19, %v612_v17  ;;  %v619_v45 = vsel %vm355_vm1, %v576_v24, 0.0  ;;  %v633_v29 = vsel %vm355_vm1, %v583_v31, 0.0  ;;  %v527_v14 = vadd.f32 %v1082_v41, %v1066_v21 }
 0x116   : > { %v615_v26 = vsel %vm355_vm1, %v574_v20, 0.0  ;;  %v827_v27 = vpop.f32.mrb[12].mxu0  ;;  %v1114_v28 = vpop.f32.mrb[12].mxu1  ;;  %v530_v44 = vadd.f32 %v1089_v49, %v1066_v21  ;;  %v635_v16 = vsel %vm355_vm1, %v584_v8, 0.0  ;;  %v637_v17 = vsel %vm355_vm1, %v585_v11, 0.0 }
 0x117   : > { %v616_v30 = vadd.f32 %v615_v26, %v614_v22  ;;  %v486_v32 = vpop.f32.mrb[13].mxu0  ;;  %v1116_v33 = vpop.f32.mrb[13].mxu1  ;;  %v495_v35 = vadd.f32 %v827_v27, %v1066_v21  ;;  %v586_v18 = vmax.f32 %v522_v23, 0.0  ;;  %v535_v19 = vadd.f32 %v1066_v21, %v1100_v4 }
 0x118   : > { %v487_v36 = vadd.f32 %v1066_v21, %v486_v32  ;;  %v828_v37 = vpop.f32.mrb[14].mxu0  ;;  %v1121_v38 = vpop.f32.mrb[14].mxu1  ;;  %v587_v52 = vmax.f32 %v527_v14, 0.0  ;;  %v588_v24 = vmax.f32 %v530_v44, 0.0  ;;  %v538_v41 = vadd.f32 %v1066_v21, %v1107_v12 }
 0x119   : > { %v618_v39 = vadd.f32 %v617_v34, %v616_v30  ;;  %v489_v40 = vpop.f32.mrb[15].mxu0  ;;  %v553_v43 = vpop.f32.mrb[15].mxu1  ;;  %v498_v47 = vadd.f32 %v828_v37, %v1066_v21  ;;  %v579_v51 = vmax.f32 %v495_v35, 0.0  ;;  %v639_v26 = vsel %vm355_vm1, %v586_v18, 0.0 }
 0x11a   : > { %v577_v46 = vmax.f32 %v487_v36, 0.0  ;;  %v490_v48 = vadd.f32 %v1066_v21, %v489_v40  ;;  %v589_v27 = vmax.f32 %v535_v19, 0.0  ;;  %v641_v49 = vsel %vm355_vm1, %v587_v52, 0.0 }
 0x11b   : > { %v620_v50 = vadd.f32 %v619_v45, %v618_v39  ;;  %v580_v56 = vmax.f32 %v498_v47, 0.0  ;;  %v625_v60 = vsel %vm355_vm1, %v579_v51, 0.0  ;;  %v543_v32 = vadd.f32 %v1098_v1, %v1066_v21 }
 0x11c   : > { %v621_v53 = vsel %vm355_vm1, %v577_v46, 0.0  ;;  %v578_v54 = vmax.f32 %v490_v48, 0.0  ;;  %v643_v34 = vsel %vm355_vm1, %v588_v24, 0.0  ;;  %v645_v4 = vsel %vm355_vm1, %v589_v27, 0.0 }
 0x11d   : > { %v622_v55 = vadd.f32 %v621_v53, %v620_v50  ;;  %v627_v0 = vsel %vm355_vm1, %v580_v56, 0.0  ;;  %v546_v36 = vadd.f32 %v1105_v9, %v1066_v21  ;;  %v590_v37 = vmax.f32 %v538_v41, 0.0 }
 0x11e   : > { %v623_v57 = vsel %vm355_vm1, %v578_v54, 0.0  ;;  %v551_v39 = vadd.f32 %v1066_v21, %v1116_v33  ;;  %v591_v12 = vmax.f32 %v543_v32, 0.0  ;;  %v554_v1 = vadd.f32 %v1066_v21, %v553_v43 }
 0x11f   : > { %v624_v59 = vadd.f32 %v623_v57, %v622_v55  ;;  %v592_v45 = vmax.f32 %v546_v36, 0.0  ;;  %v647_v46 = vsel %vm355_vm1, %v590_v37, 0.0  ;;  %v559_v51 = vadd.f32 %v1114_v28, %v1066_v21 }
 0x120   : > { %v593_v47 = vmax.f32 %v551_v39, 0.0  ;;  %v649_v50 = vsel %vm355_vm1, %v591_v12, 0.0  ;;  %v562_v54 = vadd.f32 %v1121_v38, %v1066_v21  ;;  %v594_v55 = vmax.f32 %v554_v1, 0.0 }
 0x121   : > { %v626_v62 = vadd.f32 %v625_v60, %v624_v59  ;;  %v651_v53 = vsel %vm355_vm1, %v592_v45, 0.0  ;;  %v595_v57 = vmax.f32 %v559_v51, 0.0 }
 0x122   : > { %v653_v33 = vsel %vm355_vm1, %v593_v47, 0.0  ;;  %v596_v25 = vmax.f32 %v562_v54, 0.0  ;;  %v655_v43 = vsel %vm355_vm1, %v594_v55, 0.0 }
 0x123   : > { %v628_v6 = vadd.f32 %v627_v0, %v626_v62  ;;  %v657_v60 = vsel %vm355_vm1, %v595_v57, 0.0  ;;  %v597_v62 = vld [vmem:[#allocation2] sm:$0xff] }
 0x124   : > { %v659_v28 = vsel %vm355_vm1, %v596_v25, 0.0 }
 0x125   : > { %v630_v7 = vadd.f32 %v629_v2, %v628_v6 }
 0x127   : > { %v632_v13 = vadd.f32 %v631_v10, %v630_v7 }
 0x129   : > { %v634_v15 = vadd.f32 %v633_v29, %v632_v13 }
 0x12b   : > { %v636_v20 = vadd.f32 %v635_v16, %v634_v15 }
 0x12d   : > { %v638_v22 = vadd.f32 %v637_v17, %v636_v20 }
 0x12f   : > { %v640_v30 = vadd.f32 %v639_v26, %v638_v22 }
 0x131   : > { %v642_v35 = vadd.f32 %v641_v49, %v640_v30 }
 0x133   : > { %v644_v40 = vadd.f32 %v643_v34, %v642_v35 }
 0x135   : > { %v646_v42 = vadd.f32 %v645_v4, %v644_v40 }
 0x137   : > { %v648_v48 = vadd.f32 %v647_v46, %v646_v42 }
 0x139   : > { %v650_v9 = vadd.f32 %v649_v50, %v648_v48 }
 0x13b   : > { %v652_v56 = vadd.f32 %v651_v53, %v650_v9 }
 0x13d   : > { %v654_v58 = vadd.f32 %v653_v33, %v652_v56 }
 0x13f   : > { %v656_v59 = vadd.f32 %v655_v43, %v654_v58 }
 0x141   : > { %v658_v61 = vadd.f32 %v657_v60, %v656_v59  ;;  %666 = sbr.rel (%p782_p8) target bundleno = 336 (0x150), region = 40 }
 0x143   : > { %v660_v63 = vadd.f32 %v659_v28, %v658_v61 }
 0x145   : > { %v661_v0 = vadd.f32 %v660_v63, %v597_v62 }
 0x147   : > { %662 = vst.msk [vmem:[#allocation2] sm:$0xff] %vm355_vm1, %v661_v0 }
 0x14e   : > { %v667_v21 = vld [vmem:[#allocation2] sm:$0xff] }
 0x14f   : > { %668 = vst.msk [vmem:[%s1011_s26] sm:$0xff] %vm355_vm1, %v667_v21 }
 0x150 PF: > { %s13_s16 = sadd.s32 1, %s952_s16   ;;  %s1200_s12 = smov %s944_s14 }
 0x151   : > { %p10_p9 = scmp.ge.s32.totalorder %s13_s16, 6   ;;  %s1201_s13 = smov %s948_s15 }
 0x152   : > { %s1202_s14 = smov %s1205_s17  ;;  %s1203_s15 = smov %s1209_s18 }
 0x153   :  { %12 = sbr.rel (!%p10_p9) target bundleno = 3 (0x3), region = 70 }

</bundles_post_ra>
